<compile_context>
chip_gen: v5e
topology: v5e:2x2
jax: 0.10.0
libtpu: 0.0.40
codegen_flags: <defaults>
</compile_context>

<pallas_src>
import jax
import jax.numpy as jnp
from jax.experimental import pallas as pl
from jax.experimental.pallas import tpu as pltpu


def _round_up(x: int, m: int) -> int:
    return ((x + m - 1) // m) * m


# ---------------------------------------------------------------------------
# Kernel: fused 3-layer MLP head on one packed batch tile.
#   e_ref : (bp, 128)   two original rows packed per 128 lanes
#   w1/w2 : (128, 128)  block-diagonal packed weights (VMEM-resident)
#   b1/b2 : (1, 128)
#   w3t   : (4, 128)    packed third-layer weight, pre-transposed
#   b3t   : (4, 1)
#   o_ref : (4, bp)     lane-dense (transposed) output tile
# ---------------------------------------------------------------------------
def head_kernel(e_ref, w1_ref, b1_ref, w2_ref, b2_ref, w3t_ref, b3t_ref, o_ref):
    x = e_ref[...]  # native dtype; MXU accumulates in f32 either way
    h1 = jnp.maximum(
        jnp.dot(x, w1_ref[...], preferred_element_type=jnp.float32) + b1_ref[...],
        0.0)
    h2 = jnp.maximum(
        jnp.dot(h1, w2_ref[...], preferred_element_type=jnp.float32) + b2_ref[...],
        0.0)
    # Final layer directly in transposed (lane-dense) form: (4,128) @ (bp,128)^T
    out_t = jax.lax.dot_general(
        w3t_ref[...], h2,
        dimension_numbers=(((1,), (1,)), ((), ())),
        preferred_element_type=jnp.float32) + b3t_ref[...]
    o_ref[...] = out_t.astype(o_ref.dtype)


# ---------------------------------------------------------------------------
# Wrapper
# ---------------------------------------------------------------------------
def head_forward(embeddings, params, *, block_rows: int = 1024):
    """embeddings: (N, in_dim=64) -> (N, 2)."""
    n, d_in = embeddings.shape
    d_h = params['w1'].shape[1]     # 64
    d_out = params['w3'].shape[1]   # 2
    dtype = embeddings.dtype

    # ---- pack two batch rows per 128 lanes (free row-major reshape) ----
    e = embeddings
    if n % 2:  # pad a single zero row only when N is odd (negligible)
        e = jnp.concatenate([e, jnp.zeros((1, d_in), dtype)], axis=0)
    p_rows = e.shape[0] // 2
    dk = 2 * d_in                   # 128
    dh = 2 * d_h                    # 128
    do = 2 * d_out                  # 4
    e = e.reshape(p_rows, dk)

    # ---- block-diagonal packed weights (tiny; built under jit) ----
    def blkdiag(w):
        z = jnp.zeros_like(w)
        return jnp.concatenate(
            [jnp.concatenate([w, z], axis=1), jnp.concatenate([z, w], axis=1)],
            axis=0)

    w1p = blkdiag(params['w1'])                    # (128, 128)
    b1p = jnp.tile(params['b1'], (1, 2))           # (1, 128)
    w2p = blkdiag(params['w2'])                    # (128, 128)
    b2p = jnp.tile(params['b2'], (1, 2))           # (1, 128)
    w3t = blkdiag(params['w3']).T                  # (4, 128)
    b3t = jnp.tile(params['b3'], (1, 2)).reshape(do, 1)   # (4, 1)

    # ---- batch tile: packed rows per grid step ----
    if p_rows <= 128:
        bp = p_rows                 # single full block (full-dim blocks always legal)
    else:
        cap = max(128, (block_rows // 2) // 128 * 128)
        # target >= 2 grid steps so the parallel axis can use both v7x TensorCores
        bp = min(cap, _round_up(pl.cdiv(p_rows, 2), 128))
    grid = (pl.cdiv(p_rows, bp),)   # ragged last block: OOB writes masked by Pallas

    out_t = pl.pallas_call(
        head_kernel,
        out_shape=jax.ShapeDtypeStruct((do, p_rows), dtype),
        grid_spec=pltpu.PrefetchScalarGridSpec(
            num_scalar_prefetch=0,
            grid=grid,
            in_specs=[
                pl.BlockSpec((bp, dk), lambda i: (i, 0)),    # activations (tiled)
                pl.BlockSpec((dk, dh), lambda i: (0, 0)),    # w1p (VMEM-resident)
                pl.BlockSpec((1, dh), lambda i: (0, 0)),     # b1p
                pl.BlockSpec((dh, dh), lambda i: (0, 0)),    # w2p
                pl.BlockSpec((1, dh), lambda i: (0, 0)),     # b2p
                pl.BlockSpec((do, dk), lambda i: (0, 0)),    # w3t
                pl.BlockSpec((do, 1), lambda i: (0, 0)),     # b3t
            ],
            out_specs=pl.BlockSpec((do, bp), lambda i: (0, i)),
        ),
        compiler_params=pltpu.CompilerParams(
            dimension_semantics=("parallel",),   # shard batch tiles across TCs (v7x)
        ),
    )(e, w1p, b1p, w2p, b2p, w3t, b3t)

    # Undo packing/transpose on the tiny (N,2)-sized result.
    return out_t.T.reshape(2 * p_rows, d_out)[:n]


head_forward_jit = jax.jit(head_forward, static_argnames=('block_rows',))


# ---------------------------------------------------------------------------
# Deterministic parameter init (matches Head(use_ln=False, in_dim=64)).
# Weights stored as (in_dim, out_dim), i.e. PyTorch nn.Linear weight transposed.
# ---------------------------------------------------------------------------
def init_params(key):
    def nrm(k, shape, scale=0.1):
        return scale * jax.random.normal(k, shape, dtype=jnp.float32)

    ks = jax.random.split(key, 6)
    return {
        'w1': nrm(ks[0], (64, 64)), 'b1': nrm(ks[1], (1, 64)),
        'w2': nrm(ks[2], (64, 64)), 'b2': nrm(ks[3], (1, 64)),
        'w3': nrm(ks[4], (64, 2)),  'b3': nrm(ks[5], (1, 2)),
    }


# ---------------------------------------------------------------------------
# Pure-JAX reference (same math as the PyTorch module in eval mode)
# ---------------------------------------------------------------------------
def reference_head(e, p):
    h1 = jnp.maximum(e @ p['w1'] + p['b1'], 0.0)
    h2 = jnp.maximum(h1 @ p['w2'] + p['b2'], 0.0)
    return h2 @ p['w3'] + p['b3']


if __name__ == "__main__":
    key = jax.random.PRNGKey(0)
    params = init_params(key)

    # Small case: (batch=16, in_dim=64), as produced by the DNSMOS conv trunk.
    emb = jax.random.normal(jax.random.fold_in(key, 123), (16, 64), dtype=jnp.float32)
    out = jax.block_until_ready(head_forward_jit(emb, params))
    ref = reference_head(emb, params)
    assert out.shape == (16, 2), out.shape
    assert jnp.allclose(out, ref, atol=1e-3, rtol=1e-3)

    # Odd / non-divisible batch: exercises the 1-row pack pad and the ragged
    # multi-tile grid path (p_rows=151 -> two 128-row blocks, last one partial).
    emb2 = jax.random.normal(jax.random.fold_in(key, 321), (301, 64), dtype=jnp.float32)
    out2 = jax.block_until_ready(head_forward_jit(emb2, params))
    ref2 = reference_head(emb2, params)
    assert out2.shape == (301, 2), out2.shape
    assert jnp.allclose(out2, ref2, atol=1e-3, rtol=1e-3)

    print("KERNEL_OK")
</pallas_src>

<mosaic_0001>
module attributes {stable_mosaic.version = 11 : i64} {
  func.func @head_kernel(%arg0: i32, %arg1: memref<8x128xf32, #tpu.memory_space<vmem>>, %arg2: memref<128x128xf32, #tpu.memory_space<vmem>>, %arg3: memref<1x128xf32, #tpu.memory_space<vmem>>, %arg4: memref<128x128xf32, #tpu.memory_space<vmem>>, %arg5: memref<1x128xf32, #tpu.memory_space<vmem>>, %arg6: memref<4x128xf32, #tpu.memory_space<vmem>>, %arg7: memref<4x1xf32, #tpu.memory_space<vmem>>, %arg8: memref<4x8xf32, #tpu.memory_space<vmem>>) attributes {dimension_semantics = [#tpu.dimension_semantics<parallel>], iteration_bounds = array<i64: 1>, scalar_prefetch = 0 : i64, scratch_operands = 0 : i64, tpu.core_type = #tpu.core_type<tc>, window_params = [{transform_indices = @transform_0, window_bounds = array<i64: 8, 128>}, {pipeline_mode = #tpu.pipeline_mode<synchronous>, transform_indices = @transform_1, window_bounds = array<i64: 128, 128>}, {pipeline_mode = #tpu.pipeline_mode<synchronous>, transform_indices = @transform_2, window_bounds = array<i64: 1, 128>}, {pipeline_mode = #tpu.pipeline_mode<synchronous>, transform_indices = @transform_3, window_bounds = array<i64: 128, 128>}, {pipeline_mode = #tpu.pipeline_mode<synchronous>, transform_indices = @transform_4, window_bounds = array<i64: 1, 128>}, {pipeline_mode = #tpu.pipeline_mode<synchronous>, transform_indices = @transform_5, window_bounds = array<i64: 4, 128>}, {pipeline_mode = #tpu.pipeline_mode<synchronous>, transform_indices = @transform_6, window_bounds = array<i64: 4, 1>}, {transform_indices = @transform_7, window_bounds = array<i64: 4, 8>}]} {
    %c0 = arith.constant 0 : index
    %c0_0 = arith.constant 0 : index
    %0 = vector.load %arg1[%c0, %c0_0] : memref<8x128xf32, #tpu.memory_space<vmem>>, vector<8x128xf32>
    %c0_1 = arith.constant 0 : index
    %c0_2 = arith.constant 0 : index
    %1 = vector.load %arg2[%c0_1, %c0_2] : memref<128x128xf32, #tpu.memory_space<vmem>>, vector<128x128xf32>
    %cst = arith.constant dense<0.000000e+00> : vector<8x128xf32>
    %2 = tpu.matmul %0, %1, %cst {dimension_numbers = #tpu.dot_dimension_numbers<[1], [0], [0], [1], [0, 0, 1, 1], [], []>} : vector<8x128xf32>, vector<128x128xf32>, vector<8x128xf32> -> vector<8x128xf32>
    %c0_3 = arith.constant 0 : index
    %c0_4 = arith.constant 0 : index
    %3 = vector.load %arg3[%c0_3, %c0_4] : memref<1x128xf32, #tpu.memory_space<vmem>>, vector<1x128xf32>
    %4 = vector.broadcast %3 : vector<1x128xf32> to vector<8x128xf32>
    %5 = arith.addf %2, %4 : vector<8x128xf32>
    %cst_5 = arith.constant 0.000000e+00 : f32
    %6 = vector.broadcast %cst_5 : f32 to vector<8x128xf32>
    %7 = arith.maximumf %5, %6 : vector<8x128xf32>
    %c0_6 = arith.constant 0 : index
    %c0_7 = arith.constant 0 : index
    %8 = vector.load %arg4[%c0_6, %c0_7] : memref<128x128xf32, #tpu.memory_space<vmem>>, vector<128x128xf32>
    %cst_8 = arith.constant dense<0.000000e+00> : vector<8x128xf32>
    %9 = tpu.matmul %7, %8, %cst_8 {dimension_numbers = #tpu.dot_dimension_numbers<[1], [0], [0], [1], [0, 0, 1, 1], [], []>} : vector<8x128xf32>, vector<128x128xf32>, vector<8x128xf32> -> vector<8x128xf32>
    %c0_9 = arith.constant 0 : index
    %c0_10 = arith.constant 0 : index
    %10 = vector.load %arg5[%c0_9, %c0_10] : memref<1x128xf32, #tpu.memory_space<vmem>>, vector<1x128xf32>
    %11 = vector.broadcast %10 : vector<1x128xf32> to vector<8x128xf32>
    %12 = arith.addf %9, %11 : vector<8x128xf32>
    %cst_11 = arith.constant 0.000000e+00 : f32
    %13 = vector.broadcast %cst_11 : f32 to vector<8x128xf32>
    %14 = arith.maximumf %12, %13 : vector<8x128xf32>
    %c0_12 = arith.constant 0 : index
    %c0_13 = arith.constant 0 : index
    %15 = vector.load %arg6[%c0_12, %c0_13] : memref<4x128xf32, #tpu.memory_space<vmem>>, vector<4x128xf32>
    %cst_14 = arith.constant dense<0.000000e+00> : vector<4x8xf32>
    %16 = tpu.matmul %15, %14, %cst_14 {dimension_numbers = #tpu.dot_dimension_numbers<[1], [1], [0], [0], [0, 0, 1, 0], [], []>} : vector<4x128xf32>, vector<8x128xf32>, vector<4x8xf32> -> vector<4x8xf32>
    %c0_15 = arith.constant 0 : index
    %c0_16 = arith.constant 0 : index
    %17 = vector.load %arg7[%c0_15, %c0_16] : memref<4x1xf32, #tpu.memory_space<vmem>>, vector<4x1xf32>
    %18 = vector.broadcast %17 : vector<4x1xf32> to vector<4x8xf32>
    %19 = arith.addf %16, %18 : vector<4x8xf32>
    %c0_17 = arith.constant 0 : index
    %c0_18 = arith.constant 0 : index
    %20 = vector.load %arg8[%c0_17, %c0_18] : memref<4x8xf32, #tpu.memory_space<vmem>>, vector<4x8xf32>
    tpu.vector_store %arg8[%c0_17, %c0_18], %19 {strides = array<i32>} : memref<4x8xf32, #tpu.memory_space<vmem>>, vector<4x8xf32>,
    return
  }
  func.func @transform_0(%arg0: i32) -> (i32, i32) {
    %c0_i32 = arith.constant 0 : i32
    %c0_i32_0 = arith.constant 0 : i32
    return %arg0, %c0_i32 : i32, i32
  }
  func.func @transform_1(%arg0: i32) -> (i32, i32) {
    %c0_i32 = arith.constant 0 : i32
    %c0_i32_0 = arith.constant 0 : i32
    %c0_i32_1 = arith.constant 0 : i32
    return %c0_i32, %c0_i32_0 : i32, i32
  }
  func.func @transform_2(%arg0: i32) -> (i32, i32) {
    %c0_i32 = arith.constant 0 : i32
    %c0_i32_0 = arith.constant 0 : i32
    %c0_i32_1 = arith.constant 0 : i32
    return %c0_i32, %c0_i32_0 : i32, i32
  }
  func.func @transform_3(%arg0: i32) -> (i32, i32) {
    %c0_i32 = arith.constant 0 : i32
    %c0_i32_0 = arith.constant 0 : i32
    %c0_i32_1 = arith.constant 0 : i32
    return %c0_i32, %c0_i32_0 : i32, i32
  }
  func.func @transform_4(%arg0: i32) -> (i32, i32) {
    %c0_i32 = arith.constant 0 : i32
    %c0_i32_0 = arith.constant 0 : i32
    %c0_i32_1 = arith.constant 0 : i32
    return %c0_i32, %c0_i32_0 : i32, i32
  }
  func.func @transform_5(%arg0: i32) -> (i32, i32) {
    %c0_i32 = arith.constant 0 : i32
    %c0_i32_0 = arith.constant 0 : i32
    %c0_i32_1 = arith.constant 0 : i32
    return %c0_i32, %c0_i32_0 : i32, i32
  }
  func.func @transform_6(%arg0: i32) -> (i32, i32) {
    %c0_i32 = arith.constant 0 : i32
    %c0_i32_0 = arith.constant 0 : i32
    %c0_i32_1 = arith.constant 0 : i32
    return %c0_i32, %c0_i32_0 : i32, i32
  }
  func.func @transform_7(%arg0: i32) -> (i32, i32) {
    %c0_i32 = arith.constant 0 : i32
    %c0_i32_0 = arith.constant 0 : i32
    return %c0_i32, %arg0 : i32, i32
  }
}

</mosaic_0001>

<bundles_post_ra>
// kernel: head_forward.1
= control target key start
LH: loop header
LB: loop body
LE: loop exit
PB: predicated region body
PF: predicated region fallthrough
CT: control target
= control target key end

     0   :  { %v146_v38 = vmov 0   ;;  %vm136_vm0 = vcmask 60416   ;;  %s301_s1 = inlined_call_operand.vmem [shape: f32[128,128], index: 1, kind: input, shape index: {}]   ;;  %s302_s3 = inlined_call_operand.vmem [shape: f32[128,128], index: 3, kind: input, shape index: {}]   ;;  %s303_s2 = inlined_call_operand.vmem [shape: f32[1,128], index: 2, kind: input, shape index: {}]   ;;  %s304_s0 = inlined_call_operand.vmem [shape: f32[8,128], index: 0, kind: input, shape index: {}]   ;;  %s305_s4 = inlined_call_operand.vmem [shape: f32[1,128], index: 4, kind: input, shape index: {}]   ;;  %s306_s6 = inlined_call_operand.vmem [shape: f32[4,1], index: 6, kind: input, shape index: {}]   ;;  %s307_s5 = inlined_call_operand.vmem [shape: f32[4,128], index: 5, kind: input, shape index: {}]   ;;  %s308_s7 = inlined_call_operand.vmem [shape: f32[4,8], index: 7, kind: output, shape index: {}]  }
   0x1   :  { %v42_v0 = vld [vmem:[%s301_s1 + $0x78] sm:$0xff]  ;;  %v41_v1 = vld [vmem:[%s301_s1 + $0x70] sm:$0xff]  ;;  %v40_v2 = vld [vmem:[%s301_s1 + $0x68] sm:$0xff]  ;;  %143 = vset.pattern.permute.xlu0 %v146_v38 }
   0x2   :  { %47 = vmatpush.msra.mxu0 %v42_v0  ;;  %v39_v3 = vld [vmem:[%s301_s1 + $0x60] sm:$0xff]  ;;  %v83_v4 = vld [vmem:[%s302_s3 + $0x78] sm:$0xff]  ;;  %v82_v6 = vld [vmem:[%s302_s3 + $0x70] sm:$0xff] }
   0x3   :  { %v38_v5 = vld [vmem:[%s301_s1 + $0x58] sm:$0xff]  ;;  %88 = vmatpush.msra.mxu1 %v83_v4  ;;  %v81_v7 = vld [vmem:[%s302_s3 + $0x68] sm:$0xff]  ;;  %v37_v8 = vld [vmem:[%s301_s1 + $0x50] sm:$0xff] }
   0x4   :  { %48 = vmatpush.msra.mxu0 %v41_v1  ;;  %v80_v9 = vld [vmem:[%s302_s3 + $0x60] sm:$0xff]  ;;  %v36_v10 = vld [vmem:[%s301_s1 + $0x48] sm:$0xff]  ;;  %v79_v11 = vld [vmem:[%s302_s3 + $0x58] sm:$0xff] }
   0x5   :  { %89 = vmatpush.msra.mxu1 %v82_v6  ;;  %v35_v12 = vld [vmem:[%s301_s1 + $0x40] sm:$0xff]  ;;  %v78_v13 = vld [vmem:[%s302_s3 + $0x50] sm:$0xff]  ;;  %v34_v14 = vld [vmem:[%s301_s1 + $0x38] sm:$0xff] }
   0x6   :  { %49 = vmatpush.msra.mxu0 %v40_v2  ;;  %v77_v15 = vld [vmem:[%s302_s3 + $0x48] sm:$0xff]  ;;  %v33_v16 = vld [vmem:[%s301_s1 + $0x30] sm:$0xff]  ;;  %v76_v17 = vld [vmem:[%s302_s3 + $0x40] sm:$0xff] }
   0x7   :  { %90 = vmatpush.msra.mxu1 %v81_v7  ;;  %v32_v18 = vld [vmem:[%s301_s1 + $0x28] sm:$0xff]  ;;  %v75_v19 = vld [vmem:[%s302_s3 + $0x38] sm:$0xff]  ;;  %v31_v20 = vld [vmem:[%s301_s1 + $0x20] sm:$0xff] }
   0x8   :  { %50 = vmatpush.msra.mxu0 %v39_v3  ;;  %v74_v21 = vld [vmem:[%s302_s3 + $0x30] sm:$0xff]  ;;  %v30_v22 = vld [vmem:[%s301_s1 + $0x18] sm:$0xff]  ;;  %v73_v23 = vld [vmem:[%s302_s3 + $0x28] sm:$0xff] }
   0x9   :  { %91 = vmatpush.msra.mxu1 %v80_v9  ;;  %v29_v24 = vld [vmem:[%s301_s1 + $0x10] sm:$0xff]  ;;  %v72_v25 = vld [vmem:[%s302_s3 + $0x20] sm:$0xff]  ;;  %v28_v26 = vld [vmem:[%s301_s1 + $0x8] sm:$0xff] }
   0xa   :  { %51 = vmatpush.msra.mxu0 %v38_v5  ;;  %v71_v27 = vld [vmem:[%s302_s3 + $0x18] sm:$0xff]  ;;  %v27_v28 = vld [vmem:[%s301_s1] sm:$0xff]  ;;  %v70_v30 = vld [vmem:[%s302_s3 + $0x10] sm:$0xff] }
   0xb   :  { %92 = vmatpush.msra.mxu1 %v79_v11  ;;  %v26_v29 = vld [vmem:[%s304_s0] sm:$0xff]  ;;  %v69_v31 = vld [vmem:[%s302_s3 + $0x8] sm:$0xff] }
   0xc   :  { %52 = vmatpush.msra.mxu0 %v37_v8  ;;  %v68_v32 = vld [vmem:[%s302_s3] sm:$0xff] }
   0xd   :  { %93 = vmatpush.msra.mxu1 %v78_v13  ;;  %v144_v33 = vld [vmem:[%s303_s2] ss:$0 sm:$0xff] }
   0xe   :  { %53 = vmatpush.msra.mxu0 %v36_v10  ;;  %v110_v37 = vld [vmem:[%s306_s6] sm:$0xf] }
   0xf   :  { %94 = vmatpush.msra.mxu1 %v77_v15  ;;  %113 = vperm.xlu0 %143, %v110_v37   ;;  %v145_v39 = vld [vmem:[%s305_s4] ss:$0 sm:$0xff] }
  0x10   :  { %54 = vmatpush.msra.mxu0 %v35_v12  ;;  %v109_v43 = vld [vmem:[%s307_s5] sm:$0xf] }
  0x11   :  { %95 = vmatpush.msra.mxu1 %v76_v17 }
  0x12   :  { %55 = vmatpush.msra.mxu0 %v34_v14 }
  0x13   :  { %96 = vmatpush.msra.mxu1 %v75_v19 }
  0x14   :  { %56 = vmatpush.msra.mxu0 %v33_v16 }
  0x15   :  { %97 = vmatpush.msra.mxu1 %v74_v21 }
  0x16   :  { %57 = vmatpush.msra.mxu0 %v32_v18 }
  0x17   :  { %98 = vmatpush.msra.mxu1 %v73_v23 }
  0x18   :  { %58 = vmatpush.msra.mxu0 %v31_v20 }
  0x19   :  { %99 = vmatpush.msra.mxu1 %v72_v25 }
  0x1a   :  { %59 = vmatpush.msra.mxu0 %v30_v22 }
  0x1b   :  { %100 = vmatpush.msra.mxu1 %v71_v27 }
  0x1c   :  { %60 = vmatpush.msra.mxu0 %v29_v24 }
  0x1d   :  { %101 = vmatpush.msra.mxu1 %v70_v30 }
  0x1e   :  { %61 = vmatpush.msra.mxu0 %v28_v26 }
  0x1f   :  { %102 = vmatpush.msra.mxu1 %v69_v31 }
  0x20   :  { %62 = vmatpush.msra.mxu0 %v27_v28 }
  0x21   :  { %63 = vmatmul.f32.vlgmr.msra.gmra.mxu0 %v26_v29  ;;  %103 = vmatpush.msra.mxu1 %v68_v32 }
  0x81   :  { %v114_v44 = vpop.permute.xlu0 %113 }
  0x9e   :  { %v64_v34 = vpop.f32.mrf.mxu0 }
  0x9f   :  { %v65_v35 = vadd.f32 %v144_v33, %v64_v34 }
  0xa1   :  { %v67_v36 = vmax.f32 %v65_v35, 0.0 }
  0xa3   :  { %104 = vmatmul.f32.vlgmr.msra.gmra.mxu1 %v67_v36 }
 0x120   :  { %v105_v40 = vpop.f32.mrf.mxu1 }
 0x121   :  { %v106_v41 = vadd.f32 %v145_v39, %v105_v40 }
 0x123   :  { %v108_v42 = vmax.f32 %v106_v41, 0.0 }
 0x125   :  { %131 = vmatpush.xpose.msra.mxu2 %v108_v42 }
 0x128   :  { %132 = vmatmul.f32.vlgmr.msra.gmra.mxu2 %v109_v43 }
 0x1ab   :  { %v133_v45 = vpop.f32.mrf.mxu2 }
 0x1ac   :  { %v134_v46 = vadd.f32 %v133_v45, %v114_v44 }
 0x1ae   :  { %137 = vst.msk [vmem:[%s308_s7] sm:$0xf] %vm136_vm0, %v134_v46 }

</bundles_post_ra>
